<compile_context>
chip_gen: v7x
topology: tpu7x:2x2x1
jax: 0.10.0
libtpu: 0.0.40
codegen_flags: <defaults>
</compile_context>

<pallas_src>
import jax
import jax.numpy as jnp
from jax.experimental import pallas as pl
from jax.experimental.pallas import tpu as pltpu


def _round_up(x, m):
    return (x + m - 1) // m * m


def _pad2(a, rows, cols):
    return jnp.pad(a, ((0, rows - a.shape[0]), (0, cols - a.shape[1])))


def mlp_kernel(x_ref, w1_ref, b1_ref, w2_ref, b2_ref, w3_ref, b3_ref, o_ref):
    cdt = w1_ref.dtype                       # compute dtype (bf16)
    # x arrives f32 straight from HBM; cast in-kernel (hides under the MXU).
    x = x_ref[...].astype(cdt)
    # Layer 1: Linear(input_dim -> 1024) + ReLU   (Dropout(0) is identity).
    h1 = jnp.dot(x, w1_ref[...], preferred_element_type=jnp.float32)
    h1 = jnp.maximum(h1 + b1_ref[...], 0.0).astype(cdt)
    # Layer 2: Linear(1024 -> hidden_dim) + ReLU  (Dropout(0) is identity).
    h2 = jnp.dot(h1, w2_ref[...], preferred_element_type=jnp.float32)
    h2 = jnp.maximum(h2 + b2_ref[...], 0.0).astype(cdt)
    # Layer 3: Linear(hidden_dim -> output_dim); bias added in f32.
    out = jnp.dot(h2, w3_ref[...], preferred_element_type=jnp.float32) + b3_ref[...]
    o_ref[...] = out.astype(o_ref.dtype)


def prepare_params(params, compute_dtype=jnp.bfloat16):
    """One-time (init-time) pad + cast of the weights/biases.

    Weights are stored [in_features, out_features]; output feature dims are
    zero-padded to multiples of 128 (lane-dense, numerically exact) and the
    weights are cast to the MXU-native compute dtype once, so the per-call
    forward pays no extra HBM passes over the parameters.
    """
    w1, b1, w2, b2, w3, b3 = params
    d_in, d1 = w1.shape
    d_hid = w2.shape[1]
    d_out = w3.shape[1]
    d1_p = _round_up(d1, 128)
    d_hid_p = _round_up(d_hid, 128)
    d_out_p = _round_up(d_out, 128)

    w1_p = _pad2(w1, d_in, d1_p).astype(compute_dtype)       # K dim left un-padded
    w2_p = _pad2(w2, d1_p, d_hid_p).astype(compute_dtype)
    w3_p = _pad2(w3, d_hid_p, d_out_p).astype(compute_dtype)
    b1_p = _pad2(b1, 1, d1_p).astype(jnp.float32)
    b2_p = _pad2(b2, 1, d_hid_p).astype(jnp.float32)
    b3_p = _pad2(b3, 1, d_out_p).astype(jnp.float32)
    return (w1_p, b1_p, w2_p, b2_p, w3_p, b3_p), d_out


def linear_classifier_forward(x, prepared, *, tm=256, out_dtype=jnp.float32):
    """Full 3-layer MLP in one Pallas kernel, tiled over batch."""
    (w1, b1, w2, b2, w3, b3), d_out = prepared
    M, d_in = x.shape
    assert w1.shape[0] == d_in
    d1_p = w1.shape[1]
    d_hid_p = w2.shape[1]
    d_out_p = w3.shape[1]
    comp_bytes = w1.dtype.itemsize
    out_bytes = jnp.dtype(out_dtype).itemsize

    # ---- batch tiling: pad rows only to 16 (bf16 sublane), ragged last block.
    M_p = _round_up(M, 16)
    tm = max(16, min(_round_up(tm, 16), M_p))

    # ---- generation-aware VMEM cap (per-TC; each TC keeps its own weights) --
    try:
        phys_vmem = pltpu.get_tpu_info().vmem_capacity_bytes
    except Exception:
        phys_vmem = 64 * 1024 * 1024          # conservative (v7x-sized) default
    cap = int(0.85 * phys_vmem)               # leave headroom for Mosaic scratch

    w_bytes = (d_in * d1_p + d1_p * d_hid_p + d_hid_p * d_out_p) * comp_bytes
    bias_bytes = (d1_p + d_hid_p + d_out_p) * 4

    def budget(t):
        x_b = 2 * t * d_in * x.dtype.itemsize + t * d_in * comp_bytes   # dbl-buf + cast copy
        act_b = t * (d1_p + d_hid_p) * (4 + comp_bytes)                 # f32 acc + bf16 copy
        out_b = 2 * t * d_out_p * out_bytes + t * d_out_p * 4           # dbl-buf + f32 result
        return int(1.25 * (w_bytes + bias_bytes + x_b + act_b + out_b)) + (2 << 20)

    # Shrink tm (never below 128) if resident weights + staging would blow VMEM.
    while tm > 128 and budget(tm) > cap:
        tm = max(128, tm // 2)

    vmem_single = min(max(budget(tm), 32 << 20), cap)
    vmem_double = min(max(budget(tm) + w_bytes + bias_bytes, 32 << 20), cap)

    grid = (pl.cdiv(M_p, tm),)

    cost = pl.CostEstimate(
        flops=2 * M_p * (d_in * d1_p + d1_p * d_hid_p + d_hid_p * d_out_p),
        transcendentals=0,
        bytes_accessed=M * d_in * x.dtype.itemsize + w_bytes + bias_bytes
        + M * d_out_p * out_bytes,
    )

    # Cheap row-only pad (no feature pad, no dtype cast in the wrapper).
    x_p = x if M_p == M else jnp.pad(x, ((0, M_p - M), (0, 0)))

    def build(single_buffer_weights, vmem_limit):
        if single_buffer_weights:
            # Weights/biases never change across grid steps -> one VMEM copy.
            def wspec(shape):
                return pl.BlockSpec(shape, lambda i: (0, 0),
                                    pipeline_mode=pl.Buffered(buffer_count=1))
        else:
            def wspec(shape):
                return pl.BlockSpec(shape, lambda i: (0, 0))
        return pl.pallas_call(
            mlp_kernel,
            out_shape=jax.ShapeDtypeStruct((M_p, d_out_p), out_dtype),
            grid_spec=pltpu.PrefetchScalarGridSpec(
                num_scalar_prefetch=0,
                grid=grid,
                in_specs=[
                    pl.BlockSpec((tm, d_in), lambda i: (i, 0)),   # x tile (pipelined, f32)
                    wspec((d_in, d1_p)),                          # W1 (resident, bf16)
                    wspec((1, d1_p)),                             # b1 (f32)
                    wspec((d1_p, d_hid_p)),                       # W2
                    wspec((1, d_hid_p)),                          # b2
                    wspec((d_hid_p, d_out_p)),                    # W3
                    wspec((1, d_out_p)),                          # b3
                ],
                out_specs=pl.BlockSpec((tm, d_out_p), lambda i: (i, 0)),
            ),
            # Batch axis is "parallel": with >=2 grid steps it shards across
            # v7x's 2 TensorCores (each TC holds its own resident weight copy,
            # which the per-TC budget above already accounts for).
            compiler_params=pltpu.CompilerParams(
                dimension_semantics=("parallel",),
                vmem_limit_bytes=int(vmem_limit)),
            cost_estimate=cost,
        )

    args = (x_p, w1, b1, w2, b2, w3, b3)
    try:
        out_p = build(True, vmem_single)(*args)
    except Exception as e:
        # Only fall back when the failure is specifically the single-buffer
        # pipeline mode being unsupported; re-raise anything else.
        msg = str(e)
        if not any(tok in msg for tok in ("Buffered", "pipeline_mode", "buffer_count")):
            raise
        out_p = build(False, vmem_double)(*args)

    return out_p[:M, :d_out]


def init_params(key, input_dim, hidden_dim, output_dim):
    """PyTorch-style (Kaiming-uniform-ish) init; weights stored [in, out], f32."""
    ks = jax.random.split(key, 6)

    def linear_init(kw, kb, fan_in, fan_out):
        bound = 1.0 / jnp.sqrt(jnp.float32(fan_in))
        w = jax.random.uniform(kw, (fan_in, fan_out), jnp.float32, -bound, bound)
        b = jax.random.uniform(kb, (1, fan_out), jnp.float32, -bound, bound)
        return w, b

    w1, b1 = linear_init(ks[0], ks[1], input_dim, 1024)
    w2, b2 = linear_init(ks[2], ks[3], 1024, hidden_dim)
    w3, b3 = linear_init(ks[4], ks[5], hidden_dim, output_dim)
    return (w1, b1, w2, b2, w3, b3)


if __name__ == "__main__":
    # Small shapes consistent with the module's forward: x is [batch, input_dim].
    batch, input_dim, hidden_dim, output_dim = 8, 32, 64, 16

    key = jax.random.PRNGKey(0)
    k_x, k_p = jax.random.split(key)
    x = jax.random.normal(k_x, (batch, input_dim), jnp.float32)
    params = init_params(k_p, input_dim, hidden_dim, output_dim)

    # One-time parameter preparation (pad + bf16 cast), hoisted out of forward.
    prepared = prepare_params(params)

    out = linear_classifier_forward(x, prepared)
    out = jax.block_until_ready(out)

    # Pure-JAX f32 reference of the same forward pass.
    w1, b1, w2, b2, w3, b3 = params
    ref = jnp.maximum(x @ w1 + b1, 0.0)
    ref = jnp.maximum(ref @ w2 + b2, 0.0)
    ref = ref @ w3 + b3

    assert out.shape == (batch, output_dim)
    # bf16 operands with f32 accumulation -> loosened tolerance vs f32 reference.
    max_err = float(jnp.max(jnp.abs(out - ref)))
    assert jnp.allclose(out, ref, atol=2e-2, rtol=2e-2), max_err

    print("KERNEL_OK")
</pallas_src>

<mosaic_0001>
module attributes {stable_mosaic.version = 11 : i64} {
  func.func @mlp_kernel(%arg0: i32, %arg1: memref<16x32xf32, #tpu.memory_space<vmem>>, %arg2: memref<32x1024xbf16, #tpu.memory_space<vmem>>, %arg3: memref<1x1024xf32, #tpu.memory_space<vmem>>, %arg4: memref<1024x128xbf16, #tpu.memory_space<vmem>>, %arg5: memref<1x128xf32, #tpu.memory_space<vmem>>, %arg6: memref<128x128xbf16, #tpu.memory_space<vmem>>, %arg7: memref<1x128xf32, #tpu.memory_space<vmem>>, %arg8: memref<16x128xf32, #tpu.memory_space<vmem>>) attributes {dimension_semantics = [#tpu.dimension_semantics<parallel>], iteration_bounds = array<i64: 1>, scalar_prefetch = 0 : i64, scratch_operands = 0 : i64, tpu.core_type = #tpu.core_type<tc>, window_params = [{transform_indices = @transform_0, window_bounds = array<i64: 16, 32>}, {pipeline_mode = #tpu.pipeline_mode<synchronous>, transform_indices = @transform_1, window_bounds = array<i64: 32, 1024>}, {pipeline_mode = #tpu.pipeline_mode<synchronous>, transform_indices = @transform_2, window_bounds = array<i64: 1, 1024>}, {pipeline_mode = #tpu.pipeline_mode<synchronous>, transform_indices = @transform_3, window_bounds = array<i64: 1024, 128>}, {pipeline_mode = #tpu.pipeline_mode<synchronous>, transform_indices = @transform_4, window_bounds = array<i64: 1, 128>}, {pipeline_mode = #tpu.pipeline_mode<synchronous>, transform_indices = @transform_5, window_bounds = array<i64: 128, 128>}, {pipeline_mode = #tpu.pipeline_mode<synchronous>, transform_indices = @transform_6, window_bounds = array<i64: 1, 128>}, {transform_indices = @transform_7, window_bounds = array<i64: 16, 128>}]} {
    %c0 = arith.constant 0 : index
    %c0_0 = arith.constant 0 : index
    %0 = vector.load %arg1[%c0, %c0_0] : memref<16x32xf32, #tpu.memory_space<vmem>>, vector<16x32xf32>
    %1 = arith.truncf %0 : vector<16x32xf32> to vector<16x32xbf16>
    %c0_1 = arith.constant 0 : index
    %c0_2 = arith.constant 0 : index
    %2 = vector.load %arg2[%c0_1, %c0_2] : memref<32x1024xbf16, #tpu.memory_space<vmem>>, vector<32x1024xbf16>
    %cst = arith.constant dense<0.000000e+00> : vector<16x1024xf32>
    %3 = tpu.matmul %1, %2, %cst {dimension_numbers = #tpu.dot_dimension_numbers<[1], [0], [0], [1], [0, 0, 1, 1], [], []>} : vector<16x32xbf16>, vector<32x1024xbf16>, vector<16x1024xf32> -> vector<16x1024xf32>
    %c0_3 = arith.constant 0 : index
    %c0_4 = arith.constant 0 : index
    %4 = vector.load %arg3[%c0_3, %c0_4] : memref<1x1024xf32, #tpu.memory_space<vmem>>, vector<1x1024xf32>
    %5 = vector.broadcast %4 : vector<1x1024xf32> to vector<16x1024xf32>
    %6 = arith.addf %3, %5 : vector<16x1024xf32>
    %cst_5 = arith.constant 0.000000e+00 : f32
    %7 = vector.broadcast %cst_5 : f32 to vector<16x1024xf32>
    %8 = arith.maximumf %6, %7 : vector<16x1024xf32>
    %9 = arith.truncf %8 : vector<16x1024xf32> to vector<16x1024xbf16>
    %c0_6 = arith.constant 0 : index
    %c0_7 = arith.constant 0 : index
    %10 = vector.load %arg4[%c0_6, %c0_7] : memref<1024x128xbf16, #tpu.memory_space<vmem>>, vector<1024x128xbf16>
    %cst_8 = arith.constant dense<0.000000e+00> : vector<16x128xf32>
    %11 = tpu.matmul %9, %10, %cst_8 {dimension_numbers = #tpu.dot_dimension_numbers<[1], [0], [0], [1], [0, 0, 1, 1], [], []>} : vector<16x1024xbf16>, vector<1024x128xbf16>, vector<16x128xf32> -> vector<16x128xf32>
    %c0_9 = arith.constant 0 : index
    %c0_10 = arith.constant 0 : index
    %12 = vector.load %arg5[%c0_9, %c0_10] : memref<1x128xf32, #tpu.memory_space<vmem>>, vector<1x128xf32>
    %13 = vector.broadcast %12 : vector<1x128xf32> to vector<16x128xf32>
    %14 = arith.addf %11, %13 : vector<16x128xf32>
    %cst_11 = arith.constant 0.000000e+00 : f32
    %15 = vector.broadcast %cst_11 : f32 to vector<16x128xf32>
    %16 = arith.maximumf %14, %15 : vector<16x128xf32>
    %17 = arith.truncf %16 : vector<16x128xf32> to vector<16x128xbf16>
    %c0_12 = arith.constant 0 : index
    %c0_13 = arith.constant 0 : index
    %18 = vector.load %arg6[%c0_12, %c0_13] : memref<128x128xbf16, #tpu.memory_space<vmem>>, vector<128x128xbf16>
    %cst_14 = arith.constant dense<0.000000e+00> : vector<16x128xf32>
    %19 = tpu.matmul %17, %18, %cst_14 {dimension_numbers = #tpu.dot_dimension_numbers<[1], [0], [0], [1], [0, 0, 1, 1], [], []>} : vector<16x128xbf16>, vector<128x128xbf16>, vector<16x128xf32> -> vector<16x128xf32>
    %c0_15 = arith.constant 0 : index
    %c0_16 = arith.constant 0 : index
    %20 = vector.load %arg7[%c0_15, %c0_16] : memref<1x128xf32, #tpu.memory_space<vmem>>, vector<1x128xf32>
    %21 = vector.broadcast %20 : vector<1x128xf32> to vector<16x128xf32>
    %22 = arith.addf %19, %21 : vector<16x128xf32>
    %c0_17 = arith.constant 0 : index
    %c0_18 = arith.constant 0 : index
    %23 = vector.load %arg8[%c0_17, %c0_18] : memref<16x128xf32, #tpu.memory_space<vmem>>, vector<16x128xf32>
    tpu.vector_store %arg8[%c0_17, %c0_18], %22 {strides = array<i32>} : memref<16x128xf32, #tpu.memory_space<vmem>>, vector<16x128xf32>,
    return
  }
  func.func @transform_0(%arg0: i32) -> (i32, i32) {
    %c0_i32 = arith.constant 0 : i32
    %c0_i32_0 = arith.constant 0 : i32
    return %arg0, %c0_i32 : i32, i32
  }
  func.func @transform_1(%arg0: i32) -> (i32, i32) {
    %c0_i32 = arith.constant 0 : i32
    %c0_i32_0 = arith.constant 0 : i32
    %c0_i32_1 = arith.constant 0 : i32
    return %c0_i32, %c0_i32_0 : i32, i32
  }
  func.func @transform_2(%arg0: i32) -> (i32, i32) {
    %c0_i32 = arith.constant 0 : i32
    %c0_i32_0 = arith.constant 0 : i32
    %c0_i32_1 = arith.constant 0 : i32
    return %c0_i32, %c0_i32_0 : i32, i32
  }
  func.func @transform_3(%arg0: i32) -> (i32, i32) {
    %c0_i32 = arith.constant 0 : i32
    %c0_i32_0 = arith.constant 0 : i32
    %c0_i32_1 = arith.constant 0 : i32
    return %c0_i32, %c0_i32_0 : i32, i32
  }
  func.func @transform_4(%arg0: i32) -> (i32, i32) {
    %c0_i32 = arith.constant 0 : i32
    %c0_i32_0 = arith.constant 0 : i32
    %c0_i32_1 = arith.constant 0 : i32
    return %c0_i32, %c0_i32_0 : i32, i32
  }
  func.func @transform_5(%arg0: i32) -> (i32, i32) {
    %c0_i32 = arith.constant 0 : i32
    %c0_i32_0 = arith.constant 0 : i32
    %c0_i32_1 = arith.constant 0 : i32
    return %c0_i32, %c0_i32_0 : i32, i32
  }
  func.func @transform_6(%arg0: i32) -> (i32, i32) {
    %c0_i32 = arith.constant 0 : i32
    %c0_i32_0 = arith.constant 0 : i32
    %c0_i32_1 = arith.constant 0 : i32
    return %c0_i32, %c0_i32_0 : i32, i32
  }
  func.func @transform_7(%arg0: i32) -> (i32, i32) {
    %c0_i32 = arith.constant 0 : i32
    %c0_i32_0 = arith.constant 0 : i32
    return %arg0, %c0_i32 : i32, i32
  }
}

</mosaic_0001>

<bundles_post_ra>
// kernel: tpu_custom_call.1
= control target key start
LH: loop header
LB: loop body
LE: loop exit
PB: predicated region body
PF: predicated region fallthrough
CT: control target
= control target key end

     0   :  { %12 = vsyncpa [#allocation3], 0  ;;  %s1871_s0 = inlined_call_operand.hbm [shape: f32[16,32], index: 0, kind: input, shape index: {}]   ;;  %s1872_s1 = inlined_call_operand.hbm [shape: bf16[32,1024], index: 1, kind: input, shape index: {}]   ;;  %s1873_s2 = inlined_call_operand.hbm [shape: f32[1,1024], index: 2, kind: input, shape index: {}]   ;;  %s1874_s3 = inlined_call_operand.hbm [shape: bf16[1024,128], index: 3, kind: input, shape index: {}]   ;;  %s1875_s4 = inlined_call_operand.vmem [shape: f32[1,128], index: 4, kind: input, shape index: {}]   ;;  %s1876_s5 = inlined_call_operand.hbm [shape: bf16[128,128], index: 5, kind: input, shape index: {}]   ;;  %s1877_s6 = inlined_call_operand.vmem [shape: f32[1,128], index: 6, kind: input, shape index: {}]   ;;  %s1878_s7 = inlined_call_operand.hbm [shape: f32[16,128], index: 7, kind: output, shape index: {}]  }
   0x1   :  { %13 = vsyncpa [#allocation6], 0 }
   0x2   :  { %14 = vsyncpa [#allocation9], 0 }
   0x3   :  { %15 = vsyncpa [#allocation4], 0  ;;  %s1692_s24 = smov [#allocation5]   ;;  %s1552_s28 = scalar_lea.hbm %s1872_s1, 2048 }
   0x4   :  { %s33_s25 = sshll.u32 %s1692_s24, 4  ;;  %p1553_p0 = scmp.ne.s32.totalorder %s1872_s1, %s1552_s28  ;;  %s34_s25 = int_to_ptr.vmem [resolvable:$true] %s33_s25 }
   0x5   :  { %p1556_p1 = scmp.lt.u32.totalorder %s1552_s28, %s1872_s1 }
   0x7   :  { %p1558_p2 = pnand %p1556_p1, %p1553_p0 }
   0x9   :  { %1561 = shalt.err (!%p1558_p2)
}
   0xa   :  { %s1562_s10 = scalar_lea.vmem %s34_s25, 2048  ;;  %p1567_p4 = scmp.lt.s32.totalorder %s34_s25, %s34_s25 }
   0xb   :  { %p1563_p3 = scmp.ne.s32.totalorder %s34_s25, %s1562_s10  ;;  %p1568_p5 = scmp.lt.s32.totalorder %s1562_s10, %s1562_s10 }
   0xd   :  { %p1569_p6 = por %p1568_p5, %p1567_p4 }
   0xf   :  { %p1570_p7 = pnand %p1569_p6, %p1563_p3 }
  0x11   :  { %1573 = shalt.err (!%p1570_p7)
}
  0x12   :  { %s1693_s11 = smov 512   ;;  %s1694_s12 = smov 32  }
  0x13   :  { %39 = dma.hbm_to_vmem [thread:$0]  %s1872_s1, 2048, %s34_s25, [#allocation6], %s1693_s11, %s1693_s11, %s1694_s12  }
  0x14   :  { %s1695_s15 = smov [#allocation8]   ;;  %s1574_s19 = scalar_lea.hbm %s1874_s3, 8192 }
  0x15   :  { %s55_s16 = sshll.u32 %s1695_s15, 4  ;;  %p1575_p8 = scmp.ne.s32.totalorder %s1874_s3, %s1574_s19  ;;  %s56_s16 = int_to_ptr.vmem [resolvable:$true] %s55_s16 }
  0x16   :  { %p1578_p9 = scmp.lt.u32.totalorder %s1574_s19, %s1874_s3 }
  0x18   :  { %p1580_p10 = pnand %p1578_p9, %p1575_p8 }
  0x1a   :  { %1583 = shalt.err (!%p1580_p10)
}
  0x1b   :  { %s1584_s24 = scalar_lea.vmem %s56_s16, 8192  ;;  %p1589_p12 = scmp.lt.s32.totalorder %s56_s16, %s56_s16 }
  0x1c   :  { %p1585_p11 = scmp.ne.s32.totalorder %s56_s16, %s1584_s24  ;;  %p1590_p13 = scmp.lt.s32.totalorder %s1584_s24, %s1584_s24 }
  0x1e   :  { %p1591_p0 = por %p1590_p13, %p1589_p12 }
  0x20   :  { %p1592_p1 = pnand %p1591_p0, %p1585_p11 }
  0x22   :  { %1595 = shalt.err (!%p1592_p1)
}
  0x23   :  { %s1696_s1 = smov 64   ;;  %s1697_s25 = smov 4  }
  0x24   :  { %61 = dma.hbm_to_vmem [thread:$0]  %s1874_s3, 8192, %s56_s16, [#allocation9], %s1696_s1, %s1696_s1, %s1697_s25  }
  0x25   :  { %s1698_s28 = smov [#allocation2]   ;;  %s1596_s9 = scalar_lea.hbm %s1871_s0, 256 }
  0x26   :  { %s21_s29 = sshll.u32 %s1698_s28, 4  ;;  %p1597_p2 = scmp.ne.s32.totalorder %s1871_s0, %s1596_s9  ;;  %s22_s29 = int_to_ptr.vmem [resolvable:$true] %s21_s29 }
  0x27   :  { %p1600_p3 = scmp.lt.u32.totalorder %s1596_s9, %s1871_s0 }
  0x29   :  { %p1602_p4 = pnand %p1600_p3, %p1597_p2 }
  0x2b   :  { %1605 = shalt.err (!%p1602_p4)
}
  0x2c   :  { %s1606_s14 = scalar_lea.vmem %s22_s29, 256  ;;  %p1611_p6 = scmp.lt.s32.totalorder %s22_s29, %s22_s29 }
  0x2d   :  { %p1607_p5 = scmp.ne.s32.totalorder %s22_s29, %s1606_s14  ;;  %p1612_p7 = scmp.lt.s32.totalorder %s1606_s14, %s1606_s14 }
  0x2f   :  { %p1613_p8 = por %p1612_p7, %p1611_p6 }
  0x31   :  { %p1614_p9 = pnand %p1613_p8, %p1607_p5 }
  0x33   :  { %1617 = shalt.err (!%p1614_p9)
}
  0x34   :  { %s1699_s3 = smov 128   ;;  %s1700_s15 = smov 8  }
  0x35   :  { %27 = dma.hbm_to_vmem [thread:$0]  %s1871_s0, 256, %s22_s29, [#allocation3], %s1699_s3, %s1699_s3, %s1700_s15  }
  0x36   :  { %s1701_s18 = smov [#allocation7]   ;;  %s1702_s20 = smov [#allocation10]  }
  0x37   :  { %s46_s19 = sshll.u32 %s1701_s18, 4  ;;  %s69_s21 = sshll.u32 %s1702_s20, 4  ;;  %s47_s19 = int_to_ptr.vmem [resolvable:$true] %s46_s19  ;;  %s70_s21 = int_to_ptr.vmem [resolvable:$true] %s69_s21 }
  0x38   :  { %s1618_s24 = scalar_lea.hbm %s1873_s2, 128 }
  0x39   :  { %p1619_p10 = scmp.ne.s32.totalorder %s1873_s2, %s1618_s24  ;;  %p1622_p11 = scmp.lt.u32.totalorder %s1618_s24, %s1873_s2 }
  0x3b   :  { %p1624_p12 = pnand %p1622_p11, %p1619_p10 }
  0x3d   :  { %1627 = shalt.err (!%p1624_p12)
}
  0x3e   :  { %s1628_s0 = scalar_lea.vmem %s47_s19, 128  ;;  %p1633_p0 = scmp.lt.s32.totalorder %s47_s19, %s47_s19 }
  0x3f   :  { %p1629_p13 = scmp.ne.s32.totalorder %s47_s19, %s1628_s0  ;;  %p1634_p1 = scmp.lt.s32.totalorder %s1628_s0, %s1628_s0 }
  0x41   :  { %p1635_p2 = por %p1634_p1, %p1633_p0 }
  0x43   :  { %p1636_p3 = pnand %p1635_p2, %p1629_p13 }
  0x45   :  { %1639 = shalt.err (!%p1636_p3)
}
  0x46   :  { %49 = dma.hbm_to_vmem [thread:$0]  %s1873_s2, 128, %s47_s19, [#allocation6]  }
  0x47   :  { %s1640_s11 = scalar_lea.hbm %s1876_s5, 1024 }
  0x48   :  { %p1641_p4 = scmp.ne.s32.totalorder %s1876_s5, %s1640_s11  ;;  %p1644_p5 = scmp.lt.u32.totalorder %s1640_s11, %s1876_s5 }
  0x4a   :  { %p1646_p6 = pnand %p1644_p5, %p1641_p4 }
  0x4c   :  { %1649 = shalt.err (!%p1646_p6)
}
  0x4d   :  { %s1650_s17 = scalar_lea.vmem %s70_s21, 1024  ;;  %p1655_p8 = scmp.lt.s32.totalorder %s70_s21, %s70_s21 }
  0x4e   :  { %p1651_p7 = scmp.ne.s32.totalorder %s70_s21, %s1650_s17  ;;  %p1656_p9 = scmp.lt.s32.totalorder %s1650_s17, %s1650_s17 }
  0x50   :  { %p1657_p10 = por %p1656_p9, %p1655_p8 }
  0x52   :  { %p1658_p11 = pnand %p1657_p10, %p1651_p7 }
  0x54   :  { %1661 = shalt.err (!%p1658_p11)
}
  0x55   :  { %75 = dma.hbm_to_vmem [thread:$0]  %s1876_s5, 1024, %s70_s21, [#allocation9], %s1696_s1, %s1696_s1, %s1697_s25  }
  0x56   :  { %1684 = dma.done.wait [#allocation3], 256  }
  0x57   :  { %1685 = vsyncadd [#allocation3], 4294967040 }
  0x58   :  { %1686 = dma.done.wait [#allocation6], 2176  }
  0x59   :  { %1687 = vsyncadd [#allocation6], 4294965120 }
  0x5a   :  { %1688 = dma.done.wait [#allocation9], 9216  }
  0x5b   :  { %1689 = vsyncadd [#allocation9], 4294958080  ;;  %v1703_v0 = vmov 0   ;;  %v97_v1 = vld [vmem:[#allocation5] sm:$0xff]  ;;  %v98_v8 = vld [vmem:[#allocation5 + $0x8] sm:$0xff]  ;;  %vm235_vm0 = vcmask 261120  }
  0x5c   :  { %271 = vmatprep.mubr.bf16.mxu1 %v1703_v0  ;;  %v101_v2 = vld [vmem:[#allocation5 + $0x20] sm:$0xff]  ;;  %v102_v9 = vld [vmem:[#allocation5 + $0x28] sm:$0xff]  ;;  %v94_v11 = vld [vmem:[#allocation2] sm:$0xff]  ;;  %vm1705_vm1 = vmmov 0   ;;  %s1706_s19 = smov [#allocation11]  }
  0x5d   :  { %v105_v3 = vld [vmem:[#allocation5 + $0x40] sm:$0xff]  ;;  %v1255_v4 = vcombine.high %v97_v1, %v101_v2  ;;  %v1254_v5 = vcombine.low %v97_v1, %v101_v2  ;;  %v95_v12 = vld [vmem:[#allocation2 + $0x8] sm:$0xff]  ;;  %v1257_v13 = vcombine.high %v98_v8, %v102_v9  ;;  %v106_v14 = vld [vmem:[#allocation5 + $0x48] sm:$0xff]  ;;  %v1256_v19 = vcombine.low %v98_v8, %v102_v9  ;;  %s1240_s20 = sshll.u32 %s1706_s19, 4  ;;  %s1241_s20 = int_to_ptr.vmem [resolvable:$true] %s1240_s20 }
  0x5e   :  { %v109_v6 = vld [vmem:[#allocation5 + $0x60] sm:$0xff]  ;;  %v110_v15 = vld [vmem:[#allocation5 + $0x68] sm:$0xff]  ;;  %v1817_v17 = vpack.c.bf16 %v95_v12, %v94_v11  ;;  %v99_v20 = vld [vmem:[#allocation5 + $0x10] sm:$0xff]  ;;  %s1662_s21 = scalar_lea.vmem %s1241_s20, 256  ;;  %p1667_p13 = scmp.lt.s32.totalorder %s1241_s20, %s1241_s20 }
  0x5f   :  { %v1263_v7 = vcombine.high %v105_v3, %v109_v6  ;;  %239 = vmatprep.subr.bf16.mxu1 %v1255_v4  ;;  %v1262_v10 = vcombine.low %v105_v3, %v109_v6  ;;  %v1480_v16 = vld [vmem:[#allocation8 + $0x40] sm:$0xff]   ;;  %v103_v21 = vld [vmem:[#allocation5 + $0x30] sm:$0xff]  ;;  %v1265_v23 = vcombine.high %v106_v14, %v110_v15  ;;  %v1484_v25 = vld [vmem:[#allocation8 + $0x50] sm:$0xff]   ;;  %v1264_v26 = vcombine.low %v106_v14, %v110_v15  ;;  %p1663_p12 = scmp.ne.s32.totalorder %s1241_s20, %s1662_s21  ;;  %p1668_p0 = scmp.lt.s32.totalorder %s1662_s21, %s1662_s21 }
  0x60   :  { %240 = vmatpush1.bf16.msra.mxu1 %v1254_v5  ;;  %v1481_v18 = vld [vmem:[#allocation8] sm:$0xff]   ;;  %1348 = vmatprep.subr.bf16.mxu0 %v1480_v16  ;;  %v1482_v22 = vld [vmem:[#allocation8 + $0x48] sm:$0xff]   ;;  %v1259_v29 = vcombine.high %v99_v20, %v103_v21  ;;  %v1486_v30 = vld [vmem:[#allocation8 + $0x10] sm:$0xff]   ;;  %v1258_v32 = vcombine.low %v99_v20, %v103_v21  ;;  %v115_v6 = vlaneseq }
  0x61   :  { %241 = vmatprep.subr.bf16.mxu1 %v1263_v7  ;;  %1349 = vmatpush3.bf16.msra.mxu0 %v1481_v18  ;;  %v1483_v24 = vld [vmem:[#allocation8 + $0x8] sm:$0xff]   ;;  %v1488_v31 = vld [vmem:[#allocation8 + $0x58] sm:$0xff]   ;;  %v100_v33 = vld [vmem:[#allocation5 + $0x18] sm:$0xff]  ;;  %p1669_p1 = por %p1668_p0, %p1667_p13 }
  0x62   :  { %1350 = vmatprep.subr.bf16.mxu0 %v1482_v22  ;;  %v107_v27 = vld [vmem:[#allocation5 + $0x50] sm:$0xff]  ;;  %v104_v34 = vld [vmem:[#allocation5 + $0x38] sm:$0xff]  ;;  %v1490_v36 = vld [vmem:[#allocation8 + $0x18] sm:$0xff]   ;;  %v1830_v7 = vshrl.u32 %v115_v6, 7 }
  0x63   :  { %v111_v28 = vld [vmem:[#allocation5 + $0x70] sm:$0xff]  ;;  %v1492_v37 = vld [vmem:[#allocation8 + $0x60] sm:$0xff]   ;;  %v108_v39 = vld [vmem:[#allocation5 + $0x58] sm:$0xff]  ;;  %v1261_v41 = vcombine.high %v100_v33, %v104_v34  ;;  %v1260_v44 = vcombine.low %v100_v33, %v104_v34  ;;  %p1670_p2 = pnand %p1669_p1, %p1663_p12 }
  0x64   :  { %242 = vmatpush1.bf16.msra.mxu1 %v1262_v10  ;;  %v1267_v35 = vcombine.high %v107_v27, %v111_v28  ;;  %v1266_v38 = vcombine.low %v107_v27, %v111_v28  ;;  %v112_v40 = vld [vmem:[#allocation5 + $0x78] sm:$0xff]  ;;  %v1494_v42 = vld [vmem:[#allocation8 + $0x20] sm:$0xff]   ;;  %v1496_v43 = vld [vmem:[#allocation8 + $0x68] sm:$0xff]   ;;  %v117_v8 = vsub.s32 0, %v1830_v7  ;;  %v121_v10 = vsub.s32 1, %v1830_v7 }
  0x65   :  { %282 = vmatprep.subr.bf16.mxu1 %v1257_v13  ;;  %1351 = vmatpush3.bf16.msra.mxu0 %v1483_v24  ;;  %v1269_v45 = vcombine.high %v108_v39, %v112_v40  ;;  %v1498_v46 = vld [vmem:[#allocation8 + $0x28] sm:$0xff]   ;;  %v1485_v47 = vld [vmem:[#allocation8 + $0xc0] sm:$0xff]   ;;  %v1268_v48 = vcombine.low %v108_v39, %v112_v40  ;;  %v1493_v52 = vld [vmem:[#allocation8 + $0xd0] sm:$0xff]   ;;  %v125_v16 = vsub.s32 2, %v1830_v7  ;;  %v137_v39 = vsub.s32 5, %v1830_v7 }
  0x66   :  { %1352 = vmatprep.subr.bf16.mxu0 %v1484_v25  ;;  %v1487_v49 = vld [vmem:[#allocation8 + $0x80] sm:$0xff]   ;;  %v1489_v50 = vld [vmem:[#allocation8 + $0xc8] sm:$0xff]   ;;  %v1495_v53 = vld [vmem:[#allocation8 + $0x90] sm:$0xff]  }
  0x67   :  { %1270 = vmatmul.mubr.msk.bf16.vlgmr.msra.gmra.mrb[0].mxu1 %vm235_vm0, %v1817_v17  ;;  %v1491_v51 = vld [vmem:[#allocation8 + $0x88] sm:$0xff]   ;;  %v1497_v54 = vld [vmem:[#allocation8 + $0xd8] sm:$0xff]   ;;  %v1500_v56 = vld [vmem:[#allocation8 + $0x70] sm:$0xff]  }
  0x68   :  { %283 = vmatpush1.bf16.msra.mxu1 %v1256_v19  ;;  %314 = vmatprep.mubr.bf16.mxu1 %v1703_v0  ;;  %v1499_v55 = vld [vmem:[#allocation8 + $0x98] sm:$0xff]   ;;  %v1501_v57 = vld [vmem:[#allocation8 + $0xe0] sm:$0xff]   ;;  %v1502_v58 = vld [vmem:[#allocation8 + $0x30] sm:$0xff]   ;;  %v129_v19 = vsub.s32 3, %v1830_v7 }
  0x69   :  { %284 = vmatprep.subr.bf16.mxu1 %v1265_v23  ;;  %1353 = vmatpush3.bf16.msra.mxu0 %v1486_v30  ;;  %v1503_v59 = vld [vmem:[#allocation8 + $0xa0] sm:$0xff]   ;;  %v1504_v60 = vld [vmem:[#allocation8 + $0x78] sm:$0xff]   ;;  %v1505_v61 = vld [vmem:[#allocation8 + $0xe8] sm:$0xff]  }
  0x6a   :  { %1354 = vmatprep.subr.bf16.mxu0 %v1488_v31  ;;  %v1506_v62 = vld [vmem:[#allocation8 + $0x38] sm:$0xff]   ;;  %v1507_v63 = vld [vmem:[#allocation8 + $0xa8] sm:$0xff]   ;;  %v1509_v1 = vld [vmem:[#allocation8 + $0x140] sm:$0xff]  }
  0x6b   :  { %v1510_v2 = vld [vmem:[#allocation8 + $0xb0] sm:$0xff]   ;;  %v1512_v3 = vld [vmem:[#allocation8 + $0xf8] sm:$0xff]   ;;  %v1517_v5 = vld [vmem:[#allocation8 + $0x1c0] sm:$0xff]  }
  0x6c   :  { %285 = vmatpush1.bf16.msra.mxu1 %v1264_v26  ;;  %v1514_v4 = vld [vmem:[#allocation8 + $0xb8] sm:$0xff]  }
  0x6d   :  { %325 = vmatprep.subr.bf16.mxu1 %v1259_v29  ;;  %1355 = vmatpush3.bf16.msra.mxu0 %v1490_v36  ;;  %v1833_v9 = vld [vmem:[#allocation7] sm:$0xff]  ;;  %v133_v36 = vsub.s32 4, %v1830_v7 }
  0x6e   :  { %1356 = vmatprep.subr.bf16.mxu0 %v1492_v37  ;;  %v118_v11 = vrot.slane %v1833_v9, %v117_v8  ;;  %v122_v12 = vrot.slane %v1833_v9, %v121_v10  ;;  %v126_v25 = vrot.slane %v1833_v9, %v125_v16  ;;  %v130_v28 = vrot.slane %v1833_v9, %v129_v19  ;;  %v1524_v8 = vld [vmem:[#allocation8 + $0x160] sm:$0xff]   ;;  %v1525_v10 = vld [vmem:[#allocation8 + $0x1d0] sm:$0xff]   ;;  %v1528_v19 = vld [vmem:[#allocation8 + $0x168] sm:$0xff]  }
  0x6f   :  { %1271 = vmatmul.mubr.msk.bf16.vlgmr.msra.gmra.mrb[4].mxu1 %vm235_vm0, %v1817_v17  ;;  %v1527_v16 = vld [vmem:[#allocation8 + $0x190] sm:$0xff]  }
  0x70   :  { %326 = vmatpush1.bf16.msra.mxu1 %v1258_v32  ;;  %357 = vmatprep.mubr.bf16.mxu1 %v1703_v0  ;;  %v1511_v32 = vld [vmem:[#allocation8 + $0x100] sm:$0xff]  }
  0x71   :  { %327 = vmatprep.subr.bf16.mxu1 %v1267_v35  ;;  %1357 = vmatpush3.bf16.msra.mxu0 %v1494_v42  ;;  %v1513_v35 = vld [vmem:[#allocation8 + $0x148] sm:$0xff]  }
  0x72   :  { %1358 = vmatprep.subr.bf16.mxu0 %v1496_v43  ;;  %v1515_v43 = vld [vmem:[#allocation8 + $0x108] sm:$0xff]  }
  0x74   :  { %328 = vmatpush1.bf16.msra.mxu1 %v1266_v38 }
  0x75   :  { %368 = vmatprep.subr.bf16.mxu1 %v1261_v41  ;;  %1359 = vmatpush3.bf16.msra.mxu0 %v1498_v46  ;;  %v1516_v46 = vld [vmem:[#allocation8 + $0x150] sm:$0xff]  }
  0x76   :  { %1360 = vmatprep.subr.bf16.mxu0 %v1500_v56  ;;  %v1520_v56 = vld [vmem:[#allocation8 + $0x158] sm:$0xff]  }
  0x77   :  { %1272 = vmatmul.mubr.msk.bf16.vlgmr.msra.gmra.mrb[8].mxu1 %vm235_vm0, %v1817_v17 }
  0x78   :  { %369 = vmatpush1.bf16.msra.mxu1 %v1260_v44  ;;  %400 = vmatprep.mubr.bf16.mxu1 %v1703_v0  ;;  %v1508_v0 = vld [vmem:[#allocation8 + $0xf0] sm:$0xff]  }
  0x79   :  { %370 = vmatprep.subr.bf16.mxu1 %v1269_v45  ;;  %1361 = vmatpush3.bf16.msra.mxu0 %v1502_v58 }
  0x7a   :  { %1362 = vmatprep.subr.bf16.mxu0 %v1504_v60  ;;  %v141_v60 = vsub.s32 6, %v1830_v7 }
  0x7c   :  { %371 = vmatpush1.bf16.msra.mxu1 %v1268_v48 }
  0x7d   :  { %1370 = vmatprep.subr.bf16.mxu1 %v1485_v47  ;;  %1363 = vmatpush3.bf16.msra.mxu0 %v1506_v62  ;;  %v134_v47 = vrot.slane %v1833_v9, %v133_v36  ;;  %v1534_v36 = vld [vmem:[#allocation8 + $0x130] sm:$0xff]  }
  0x7e   :  { %1392 = vmatprep.subr.bf16.mxu0 %v1509_v1 }
  0x7f   :  { %1273 = vmatmul.mubr.msk.bf16.vlgmr.msra.gmra.mrb[12].mxu1 %vm235_vm0, %v1817_v17 }
  0x80   :  { %1371 = vmatpush3.bf16.msra.mxu1 %v1487_v49 }
  0x81   :  { %1372 = vmatprep.subr.bf16.mxu1 %v1489_v50  ;;  %v138_v50 = vrot.slane %v1833_v9, %v137_v39  ;;  %v1536_v39 = vld [vmem:[#allocation8 + $0x178] sm:$0xff]  }
  0x84   :  { %1373 = vmatpush3.bf16.msra.mxu1 %v1491_v51 }
  0x85   :  { %1374 = vmatprep.subr.bf16.mxu1 %v1493_v52 }
  0x88   :  { %1375 = vmatpush3.bf16.msra.mxu1 %v1495_v53  ;;  %v1518_v53 = vld [vmem:[#allocation8 + $0x110] sm:$0xff]  }
  0x89   :  { %1376 = vmatprep.subr.bf16.mxu1 %v1497_v54  ;;  %v1519_v54 = vld [vmem:[#allocation8 + $0x180] sm:$0xff]  }
  0x8c   :  { %1377 = vmatpush3.bf16.msra.mxu1 %v1499_v55 }
  0x8d   :  { %1378 = vmatprep.subr.bf16.mxu1 %v1501_v57  ;;  %v1521_v57 = vld [vmem:[#allocation8 + $0x1c8] sm:$0xff]  }
  0x90   :  { %1379 = vmatpush3.bf16.msra.mxu1 %v1503_v59 }
  0x91   :  { %1380 = vmatprep.subr.bf16.mxu1 %v1505_v61 }
  0x94   :  { %1381 = vmatpush3.bf16.msra.mxu1 %v1507_v63  ;;  %v145_v63 = vsub.s32 7, %v1830_v7 }
  0x95   :  { %1382 = vmatprep.subr.bf16.mxu1 %v1508_v0 }
  0x96   :  { %v146_v7 = vrot.slane %v1833_v9, %v145_v63 }
  0x98   :  { %1383 = vmatpush3.bf16.msra.mxu1 %v1510_v2 }
  0x99   :  { %1384 = vmatprep.subr.bf16.mxu1 %v1512_v3  ;;  %v1522_v3 = vld [vmem:[#allocation8 + $0x118] sm:$0xff]  }
  0x9c   :  { %1385 = vmatpush3.bf16.msra.mxu1 %v1514_v4  ;;  %v1523_v4 = vld [vmem:[#allocation8 + $0x188] sm:$0xff]  }
  0x9d   :  { %1414 = vmatprep.subr.bf16.mxu1 %v1517_v5 }
 0x13a   :  { %v273_v13 = vpop.f32.mrb[0].mxu1 }
 0x13b   :  { %v274_v14 = vadd.f32 %v273_v13, %v118_v11  ;;  %v275_v15 = vpop.f32.mrb[1].mxu1 }
 0x13c   :  { %v276_v17 = vadd.f32 %v275_v15, %v122_v12  ;;  %v277_v18 = vpop.f32.mrb[2].mxu1  ;;  %v1526_v15 = vld [vmem:[#allocation8 + $0x120] sm:$0xff]  }
 0x13d   :  { %v278_v20 = vadd.f32 %v277_v18, %v118_v11  ;;  %v279_v21 = vpop.f32.mrb[3].mxu1  ;;  %v411_v23 = vmax.f32 %v274_v14, 0.0 }
 0x13e   :  { %v280_v22 = vadd.f32 %v279_v21, %v122_v12  ;;  %v412_v26 = vmax.f32 %v276_v17, 0.0  ;;  %v142_v12 = vrot.slane %v1833_v9, %v141_v60  ;;  %v1530_v9 = vld [vmem:[#allocation8 + $0x128] sm:$0xff]  }
 0x13f   :  { %v419_v24 = vmax.f32 %v278_v20, 0.0  ;;  %v1529_v20 = vld [vmem:[#allocation8 + $0x1d8] sm:$0xff]  }
 0x140   :  { %v420_v27 = vmax.f32 %v280_v22, 0.0 }
 0x141   :  { %v427_v29 = vpack.c.bf16 %v419_v24, %v411_v23 }
 0x142   :  { %v316_v30 = vpop.f32.mrb[4].mxu1  ;;  %v428_v31 = vpack.c.bf16 %v420_v27, %v412_v26 }
 0x143   :  { %v317_v33 = vadd.f32 %v316_v30, %v126_v25  ;;  %v318_v34 = vpop.f32.mrb[5].mxu1 }
 0x144   :  { %v319_v37 = vadd.f32 %v318_v34, %v130_v28  ;;  %v320_v38 = vpop.f32.mrb[6].mxu1  ;;  %986 = vmatprep.mubr.bf16.mxu0 %v428_v31  ;;  %v1532_v31 = vld [vmem:[#allocation8 + $0x170] sm:$0xff]  }
 0x145   :  { %v321_v40 = vadd.f32 %v320_v38, %v126_v25  ;;  %v322_v41 = vpop.f32.mrb[7].mxu1  ;;  %987 = vmatmul.mubr.bf16.vlgmr.msra.gmra.mrb[0].mxu0 %v427_v29  ;;  %v413_v44 = vmax.f32 %v317_v33, 0.0 }
 0x146   :  { %v323_v42 = vadd.f32 %v322_v41, %v130_v28  ;;  %1393 = vmatpush3.bf16.msra.mxu0 %v1511_v32  ;;  %v414_v48 = vmax.f32 %v319_v37, 0.0  ;;  %v1531_v28 = vld [vmem:[#allocation8 + $0x198] sm:$0xff]   ;;  %v1533_v32 = vld [vmem:[#allocation8 + $0x1e0] sm:$0xff]  }
 0x147   :  { %v421_v45 = vmax.f32 %v321_v40, 0.0  ;;  %1394 = vmatprep.subr.bf16.mxu0 %v1513_v35  ;;  %v1535_v37 = vld [vmem:[#allocation8 + $0x1a0] sm:$0xff]   ;;  %v1537_v40 = vld [vmem:[#allocation8 + $0x1e8] sm:$0xff]   ;;  %v1538_v41 = vld [vmem:[#allocation8 + $0x138] sm:$0xff]  }
 0x148   :  { %v422_v49 = vmax.f32 %v323_v42, 0.0  ;;  %v1539_v42 = vld [vmem:[#allocation8 + $0x1a8] sm:$0xff]  }
 0x149   :  { %v429_v51 = vpack.c.bf16 %v421_v45, %v413_v44  ;;  %v1541_v44 = vld [vmem:[#allocation8 + $0x1b0] sm:$0xff]   ;;  %v1542_v45 = vld [vmem:[#allocation8 + $0x1f8] sm:$0xff]  }
 0x14a   :  { %v430_v52 = vpack.c.bf16 %v422_v49, %v414_v48  ;;  %1395 = vmatpush3.bf16.msra.mxu0 %v1515_v43  ;;  %v359_v55 = vpop.f32.mrb[8].mxu1  ;;  %v1540_v43 = vld [vmem:[#allocation8 + $0x1f0] sm:$0xff]   ;;  %v1704_v48 = vmov 0.0   ;;  %v1545_v49 = vld [vmem:[#allocation10 + $0x8] sm:$0xff]  }
 0x14b   :  { %1396 = vmatprep.subr.bf16.mxu0 %v1516_v46  ;;  %v360_v58 = vadd.f32 %v359_v55, %v134_v47  ;;  %v361_v59 = vpop.f32.mrb[9].mxu1  ;;  %v1543_v46 = vld [vmem:[#allocation8 + $0x1b8] sm:$0xff]  }
 0x14c   :  { %1027 = vmatprep.mubr.bf16.mxu1 %v430_v52  ;;  %v362_v61 = vadd.f32 %v361_v59, %v138_v50  ;;  %v363_v62 = vpop.f32.mrb[10].mxu1  ;;  %v1548_v52 = vld [vmem:[#allocation10 + $0x20] sm:$0xff]   ;;  %v1551_v55 = vld [vmem:[#allocation10 + $0x38] sm:$0xff]  }
 0x14d   :  { %1028 = vmatmul.mubr.bf16.vlgmr.msra.gmra.mrb[16].mxu1 %v429_v51  ;;  %v415_v0 = vmax.f32 %v360_v58, 0.0  ;;  %v364_v1 = vadd.f32 %v363_v62, %v134_v47  ;;  %v365_v2 = vpop.f32.mrb[11].mxu1  ;;  %v1544_v47 = vld [vmem:[#allocation10] sm:$0xff]   ;;  %v1547_v51 = vld [vmem:[#allocation10 + $0x18] sm:$0xff]   ;;  %v1274_v62 = vld [vmem:[%s1875_s4] ss:$0 sm:$0xff] }
 0x14e   :  { %1397 = vmatpush3.bf16.msra.mxu0 %v1518_v53  ;;  %1415 = vmatpush3.bf16.msra.mxu1 %v1519_v54  ;;  %v416_v5 = vmax.f32 %v362_v61, 0.0  ;;  %v366_v6 = vadd.f32 %v365_v2, %v138_v50  ;;  %v1546_v50 = vld [vmem:[#allocation10 + $0x10] sm:$0xff]   ;;  %v1549_v53 = vld [vmem:[#allocation10 + $0x28] sm:$0xff]  }
 0x14f   :  { %1398 = vmatprep.subr.bf16.mxu0 %v1520_v56  ;;  %1416 = vmatprep.subr.bf16.mxu1 %v1521_v57  ;;  %v423_v11 = vmax.f32 %v364_v1, 0.0  ;;  %v1550_v54 = vld [vmem:[#allocation10 + $0x30] sm:$0xff]  }
 0x150   :  { %v424_v13 = vmax.f32 %v366_v6, 0.0 }
 0x151   :  { %v431_v14 = vpack.c.bf16 %v423_v11, %v415_v0 }
 0x152   :  { %1399 = vmatpush3.bf16.msra.mxu0 %v1522_v3  ;;  %1417 = vmatpush3.bf16.msra.mxu1 %v1523_v4  ;;  %v432_v17 = vpack.c.bf16 %v424_v13, %v416_v5  ;;  %v402_v18 = vpop.f32.mrb[12].mxu1 }
 0x153   :  { %1400 = vmatprep.subr.bf16.mxu0 %v1524_v8  ;;  %1418 = vmatprep.subr.bf16.mxu1 %v1525_v10  ;;  %v403_v21 = vadd.f32 %v402_v18, %v142_v12  ;;  %v404_v22 = vpop.f32.mrb[13].mxu1 }
 0x154   :  { %v405_v23 = vadd.f32 %v404_v22, %v146_v7  ;;  %v406_v24 = vpop.f32.mrb[14].mxu1  ;;  %1068 = vmatprep.mubr.bf16.mxu0 %v432_v17 }
 0x155   :  { %v417_v25 = vmax.f32 %v403_v21, 0.0  ;;  %v407_v26 = vadd.f32 %v406_v24, %v142_v12  ;;  %v408_v27 = vpop.f32.mrb[15].mxu1 }
 0x156   :  { %1401 = vmatpush3.bf16.msra.mxu0 %v1526_v15  ;;  %1419 = vmatpush3.bf16.msra.mxu1 %v1527_v16  ;;  %v418_v29 = vmax.f32 %v405_v23, 0.0  ;;  %v409_v30 = vadd.f32 %v408_v27, %v146_v7 }
 0x157   :  { %1402 = vmatprep.subr.bf16.mxu0 %v1528_v19  ;;  %1420 = vmatprep.subr.bf16.mxu1 %v1529_v20  ;;  %v425_v33 = vmax.f32 %v407_v26, 0.0 }
 0x158   :  { %v426_v34 = vmax.f32 %v409_v30, 0.0 }
 0x159   :  { %v433_v35 = vpack.c.bf16 %v425_v33, %v417_v25 }
 0x15a   :  { %1403 = vmatpush3.bf16.msra.mxu0 %v1530_v9  ;;  %1421 = vmatpush3.bf16.msra.mxu1 %v1531_v28  ;;  %v434_v38 = vpack.c.bf16 %v426_v34, %v418_v29  ;;  %v1339_v28 = vld [vmem:[%s1877_s6] ss:$0 sm:$0xff] }
 0x15b   :  { %1404 = vmatprep.subr.bf16.mxu0 %v1532_v31  ;;  %1422 = vmatprep.subr.bf16.mxu1 %v1533_v32 }
 0x15c   :  { %1109 = vmatprep.mubr.bf16.mxu1 %v434_v38 }
 0x15e   :  { %1405 = vmatpush3.bf16.msra.mxu0 %v1534_v36  ;;  %1423 = vmatpush3.bf16.msra.mxu1 %v1535_v37 }
 0x15f   :  { %1406 = vmatprep.subr.bf16.mxu0 %v1536_v39  ;;  %1424 = vmatprep.subr.bf16.mxu1 %v1537_v40 }
 0x162   :  { %1407 = vmatpush3.bf16.msra.mxu0 %v1538_v41  ;;  %1425 = vmatpush3.bf16.msra.mxu1 %v1539_v42 }
 0x163   :  { %1426 = vmatprep.subr.bf16.mxu1 %v1540_v43  ;;  %1445 = vmatprep.subr.bf16.mxu0 %v1704_v48 }
 0x165   :  { %1069 = vmatmul.mubr.bf16.vlgmr.msra.gmra.mrb[4].mxu0 %v431_v14 }
 0x166   :  { %1427 = vmatpush3.bf16.msra.mxu1 %v1541_v44  ;;  %1446 = vmatpush3.bf16.msra.mxu0 %v1544_v47 }
 0x167   :  { %1428 = vmatprep.subr.bf16.mxu1 %v1542_v45  ;;  %1447 = vmatprep.subr.bf16.mxu0 %v1704_v48 }
 0x168   :  { %1461 = vmatprep.mubr.msk.bf16.mxu0 %vm1705_vm1, %v1704_v48 }
 0x16a   :  { %1429 = vmatpush3.bf16.msra.mxu1 %v1543_v46  ;;  %1448 = vmatpush3.bf16.msra.mxu0 %v1545_v49 }
 0x16b   :  { %1449 = vmatprep.subr.bf16.mxu0 %v1704_v48 }
 0x16d   :  { %1110 = vmatmul.mubr.bf16.vlgmr.msra.gmra.mrb[20].mxu1 %v433_v35 }
 0x16e   :  { %1450 = vmatpush3.bf16.msra.mxu0 %v1546_v50 }
 0x16f   :  { %1451 = vmatprep.subr.bf16.mxu0 %v1704_v48 }
 0x172   :  { %1452 = vmatpush3.bf16.msra.mxu0 %v1547_v51 }
 0x173   :  { %1453 = vmatprep.subr.bf16.mxu0 %v1704_v48 }
 0x176   :  { %1454 = vmatpush3.bf16.msra.mxu0 %v1548_v52 }
 0x177   :  { %1455 = vmatprep.subr.bf16.mxu0 %v1704_v48 }
 0x17a   :  { %1456 = vmatpush3.bf16.msra.mxu0 %v1549_v53 }
 0x17b   :  { %1457 = vmatprep.subr.bf16.mxu0 %v1704_v48 }
 0x17e   :  { %1458 = vmatpush3.bf16.msra.mxu0 %v1550_v54 }
 0x17f   :  { %1459 = vmatprep.subr.bf16.mxu0 %v1704_v48 }
 0x182   :  { %1460 = vmatpush3.bf16.msra.mxu0 %v1551_v55 }
 0x218   :  { %v1364_v56 = vpop.f32.mrb[0].mxu0 }
 0x219   :  { %v1365_v57 = vpop.f32.mrb[1].mxu0 }
 0x21a   :  { %v1366_v58 = vadd.f32 %v1365_v57, %v1364_v56  ;;  %v1367_v59 = vpop.f32.mrb[2].mxu0 }
 0x21b   :  { %v1368_v60 = vpop.f32.mrb[3].mxu0 }
 0x21c   :  { %v1369_v61 = vadd.f32 %v1368_v60, %v1367_v59  ;;  %v989_v1 = vadd.f32 %v1366_v58, %v1274_v62 }
 0x21e   :  { %v992_v5 = vadd.f32 %v1369_v61, %v1274_v62 }
 0x220   :  { %v1386_v63 = vpop.f32.mrb[16].mxu1 }
 0x221   :  { %v1387_v0 = vpop.f32.mrb[17].mxu1 }
 0x222   :  { %v1388_v2 = vadd.f32 %v1387_v0, %v1386_v63  ;;  %v1389_v3 = vpop.f32.mrb[18].mxu1 }
 0x223   :  { %v1390_v4 = vpop.f32.mrb[19].mxu1 }
 0x224   :  { %v1030_v6 = vadd.f32 %v1388_v2, %v989_v1  ;;  %v1391_v8 = vadd.f32 %v1390_v4, %v1389_v3 }
 0x226   :  { %v1033_v10 = vadd.f32 %v1391_v8, %v992_v5 }
 0x238   :  { %v1408_v11 = vpop.f32.mrb[4].mxu0 }
 0x239   :  { %v1409_v12 = vpop.f32.mrb[5].mxu0 }
 0x23a   :  { %v1410_v13 = vadd.f32 %v1409_v12, %v1408_v11  ;;  %v1411_v7 = vpop.f32.mrb[6].mxu0 }
 0x23b   :  { %v1412_v14 = vpop.f32.mrb[7].mxu0 }
 0x23c   :  { %v1071_v15 = vadd.f32 %v1410_v13, %v1030_v6  ;;  %v1413_v16 = vadd.f32 %v1412_v14, %v1411_v7 }
 0x23e   :  { %v1074_v17 = vadd.f32 %v1413_v16, %v1033_v10 }
 0x240   :  { %v1430_v18 = vpop.f32.mrb[20].mxu1 }
 0x241   :  { %v1431_v19 = vpop.f32.mrb[21].mxu1 }
 0x242   :  { %v1432_v20 = vadd.f32 %v1431_v19, %v1430_v18  ;;  %v1433_v21 = vpop.f32.mrb[22].mxu1 }
 0x243   :  { %v1434_v22 = vpop.f32.mrb[23].mxu1 }
 0x244   :  { %v1112_v23 = vadd.f32 %v1432_v20, %v1071_v15  ;;  %v1435_v24 = vadd.f32 %v1434_v22, %v1433_v21 }
 0x246   :  { %v1115_v25 = vadd.f32 %v1435_v24, %v1074_v17  ;;  %v1118_v26 = vmax.f32 %v1112_v23, 0.0 }
 0x248   :  { %v1119_v27 = vmax.f32 %v1115_v25, 0.0 }
 0x24a   :  { %v1120_v9 = vpack.c.bf16 %v1119_v27, %v1118_v26 }
 0x24c   :  { %1462 = vmatmul.mubr.bf16.vlgmr.msra.gmra.mrb[8].mxu0 %v1120_v9 }
 0x31f   :  { %v1226_v29 = vpop.f32.mrb[8].mxu0 }
 0x320   :  { %v1227_v30 = vadd.f32 %v1339_v28, %v1226_v29  ;;  %v1463_v31 = vpop.f32.mrb[9].mxu0 }
 0x321   :  { %v1229_v32 = vpop.f32.mrb[10].mxu0 }
 0x322   :  { %1233 = vst [vmem:[#allocation11] sm:$0xff] %v1227_v30  ;;  %v1230_v33 = vadd.f32 %v1339_v28, %v1229_v32  ;;  %v1464_v34 = vpop.f32.mrb[11].mxu0 }
 0x324   :  { %1234 = vst [vmem:[#allocation11 + $0x8] sm:$0xff] %v1230_v33 }
 0x325   :  { %1673 = shalt.err (!%p1670_p2)
}
 0x326   :  { %s1674_s23 = scalar_lea.hbm %s1878_s7, 256 }
 0x327   :  { %p1675_p3 = scmp.ne.s32.totalorder %s1878_s7, %s1674_s23  ;;  %p1678_p4 = scmp.lt.u32.totalorder %s1674_s23, %s1878_s7 }
 0x329   :  { %p1680_p5 = pnand %p1678_p4, %p1675_p3 }
 0x32b   :  { %1683 = shalt.err (!%p1680_p5)
}
 0x32c   :  { %1246 = dma.vmem_to_hbm [thread:$0]  %s1241_s20, 256, %s1878_s7, [#allocation4], %s1699_s3, %s1699_s3, %s1700_s15  }
 0x32d   :  { %1690 = dma.done.wait [#allocation4], 256  }
 0x32e   :  { %1691 = vsyncadd [#allocation4], 4294967040 }
 0x32f   :  { %1250 = vsyncpa [#allocation3], 1 }
 0x330   :  { %1251 = vsyncpa [#allocation6], 1 }
 0x331   :  { %1252 = vsyncpa [#allocation9], 1 }
 0x332   :  { %1253 = vsyncpa [#allocation4], 1 }

</bundles_post_ra>
